<compile_context>
chip_gen: v6e
topology: v6e:2x2x1
jax: 0.10.0
libtpu: 0.0.40
codegen_flags: <defaults>
</compile_context>

<pallas_src>
import math

import jax
import jax.numpy as jnp
from jax.experimental import pallas as pl
from jax.experimental.pallas import tpu as pltpu


_MAX_UNROLL_ROWS = 16          # batch rows per grid step handled by unrolled 2-D transposes
_VMEM_TILE_BUDGET = 4 << 20    # bytes for one in+out tile pair (x2 for double buffering)


def _round_up(v: int, m: int) -> int:
    return -(-v // m) * m


def _padded_tile_bytes(tb: int, a: int, td: int, itemsize: int) -> int:
    """VMEM bytes of one (tb, a, td) input tile + (tb, td, a) output tile,
    including (8, 128) vreg padding of the last two dims."""
    in_b = tb * _round_up(a, 8) * _round_up(td, 128) * itemsize
    out_b = tb * _round_up(td, 8) * _round_up(a, 128) * itemsize
    return in_b + out_b


def _choose_tiles(b_total: int, a: int, bd: int, itemsize: int,
                  vmem_budget: int = _VMEM_TILE_BUDGET) -> tuple[int, int]:
    """Pick (batch_tile tb, lane_tile td): padded in+out tile pair stays under
    `vmem_budget` (x2 for double buffering) while keeping DMAs large and leaving
    >= 2 grid steps for megacore whenever the shape allows it."""
    # Lane-axis tile: full extent when it fits; otherwise a 128-multiple divisor.
    td = bd
    if bd % 128 == 0:
        while td > 128 and _padded_tile_bytes(1, a, td, itemsize) > vmem_budget:
            nxt = td - 128
            while nxt > 128 and bd % nxt:
                nxt -= 128
            td = nxt
    # Batch-axis tile: as many rows as fit the budget.
    per = max(_padded_tile_bytes(1, a, td, itemsize), 1)
    tb = int(min(b_total, max(1, vmem_budget // per)))
    # Keep >= 2 grid steps when the batch allows it, so both v7x TensorCores
    # (dimension_semantics="parallel") get work.
    if bd // td == 1 and b_total >= 2:
        tb = min(tb, b_total // 2)
    tb = max(tb, 1)
    while b_total % tb:
        tb -= 1
    # If the whole problem still collapsed to a single grid step, split the lane
    # axis (when it stays a 128-multiple divisor) so both cores get a tile.
    if b_total // tb == 1 and bd // td == 1 and bd % 256 == 0:
        td = bd // 2
    return tb, td


def _block_swap_decomposition(order: tuple[int, ...]):
    """Return (p, s) if `order` == [0..p) + [s..n) + [p..s), i.e. the permute is
    a single swap of two contiguous axis groups (covers NCHW<->NHWC etc.)."""
    n = len(order)
    p = 0
    while p < n and order[p] == p:
        p += 1
    if p == n:
        return None  # identity
    s = order[p]
    if tuple(order[p:]) == tuple(range(s, n)) + tuple(range(p, s)):
        return p, s
    return None


def _fallback_full_transpose(x: jax.Array, order: tuple[int, ...]) -> jax.Array:
    """Whole-array single-block kernel for orders that are not a contiguous
    axis-group swap (e.g. (0, 2, 1, 3)). Correct; meant for small tensors."""
    # TODO(synk): tile this path as well if such orders ever show up at scale.
    out_shape = tuple(x.shape[i] for i in order)

    def kernel(x_ref, o_ref):
        o_ref[...] = jnp.transpose(x_ref[...], order)

    return pl.pallas_call(
        kernel,
        out_shape=jax.ShapeDtypeStruct(out_shape, x.dtype),
        cost_estimate=pl.CostEstimate(
            flops=0, transcendentals=0,
            bytes_accessed=2 * x.size * x.dtype.itemsize),
    )(x)


def permute_pallas(x: jax.Array, order) -> jax.Array:
    """Pallas implementation of torch.Tensor.permute(order)."""
    n = x.ndim
    order = tuple(int(a) % n for a in order)   # allow negative axes, like torch
    assert sorted(order) == list(range(n)), "order must be a permutation"

    if order == tuple(range(n)):
        return x  # identity permute is a no-op

    dec = _block_swap_decomposition(order)
    if dec is None:
        return _fallback_full_transpose(x, order)
    p, s = dec

    shape = x.shape
    b_total = math.prod(shape[:p])      # leading axes that stay in place
    a = math.prod(shape[p:s])           # group that moves to the back (e.g. C)
    bd = math.prod(shape[s:])           # group that moves forward (e.g. H*W)
    itemsize = x.dtype.itemsize

    tb, td = _choose_tiles(b_total, a, bd, itemsize)
    grid = (b_total // tb, bd // td)

    # Free reshape (contiguous collapse): [prefix..., A..., B...] -> [B_total, A, Bd].
    x3 = x.reshape(b_total, a, bd)

    def kernel(x_ref, o_ref):
        if tb <= _MAX_UNROLL_ROWS:
            # Statically unrolled per-row 2-D sublane<->lane XLU transposes
            # (known-good lowering; the size-tb batch axis is indexed with
            # static integers, so every op inside is a plain 2-D transpose).
            for b in range(tb):
                o_ref[b] = x_ref[b].T
        else:
            # Very large batch tiles: single batched minor-dims transpose.
            o_ref[...] = jnp.swapaxes(x_ref[...], 1, 2)

    y3 = pl.pallas_call(
        kernel,
        out_shape=jax.ShapeDtypeStruct((b_total, bd, a), x.dtype),
        grid=grid,
        in_specs=[pl.BlockSpec((tb, a, td), lambda i, j: (i, 0, j))],
        out_specs=pl.BlockSpec((tb, td, a), lambda i, j: (i, j, 0)),
        compiler_params=pltpu.CompilerParams(
            dimension_semantics=("parallel", "parallel")),
        cost_estimate=pl.CostEstimate(
            flops=0, transcendentals=0,
            bytes_accessed=2 * x.size * itemsize),
    )(x3)

    # Free reshape (contiguous expand of the collapsed groups) to the permuted shape.
    out_final = tuple(shape[i] for i in order)
    return y3.reshape(out_final)


if __name__ == "__main__":
    key = jax.random.PRNGKey(0)
    # Small NCHW input consistent with a Permute(0, 2, 3, 1) usage.
    x = jax.random.normal(key, (2, 4, 16, 16), dtype=jnp.float32)

    # NCHW -> NHWC, same semantics as x.permute(0, 2, 3, 1).
    order = (0, 2, 3, 1)
    y = jax.block_until_ready(permute_pallas(x, order))
    ref = jnp.transpose(x, order)
    assert y.shape == ref.shape and y.dtype == ref.dtype
    assert bool(jnp.array_equal(y, ref)), "Pallas permute mismatch (0,2,3,1)"

    # Second order exercising the same kernel path (NHWC -> NCHW style).
    order2 = (0, 3, 1, 2)
    y2 = jax.block_until_ready(permute_pallas(x, order2))
    ref2 = jnp.transpose(x, order2)
    assert bool(jnp.array_equal(y2, ref2)), "Pallas permute mismatch (0,3,1,2)"

    # Larger batch exercising the multi-row (unrolled) tile path.
    x3 = jax.random.normal(jax.random.PRNGKey(1), (8, 4, 16, 16), dtype=jnp.float32)
    y3 = jax.block_until_ready(permute_pallas(x3, order))
    ref3 = jnp.transpose(x3, order)
    assert bool(jnp.array_equal(y3, ref3)), "Pallas permute mismatch (batched tile)"

    print("KERNEL_OK")
</pallas_src>

<mosaic_0001>
module attributes {stable_mosaic.version = 11 : i64} {
  func.func @kernel(%arg0: i32, %arg1: i32, %arg2: memref<1x4x256xf32, #tpu.memory_space<vmem>>, %arg3: memref<1x256x4xf32, #tpu.memory_space<vmem>>) attributes {dimension_semantics = [#tpu.dimension_semantics<parallel>, #tpu.dimension_semantics<parallel>], iteration_bounds = array<i64: 2, 1>, scalar_prefetch = 0 : i64, scratch_operands = 0 : i64, tpu.core_type = #tpu.core_type<tc>, window_params = [{transform_indices = @transform_0, window_bounds = array<i64: 1, 4, 256>}, {transform_indices = @transform_1, window_bounds = array<i64: 1, 256, 4>}]} {
    %c0 = arith.constant 0 : index
    %c0_0 = arith.constant 0 : index
    %c0_1 = arith.constant 0 : index
    %0 = vector.load %arg2[%c0, %c0_0, %c0_1] : memref<1x4x256xf32, #tpu.memory_space<vmem>>, vector<1x4x256xf32>
    %1 = vector.shape_cast %0 : vector<1x4x256xf32> to vector<4x256xf32>
    %2 = tpu.transpose %1, [1, 0] : vector<4x256xf32> -> vector<256x4xf32>
    %c0_2 = arith.constant 0 : index
    %c0_3 = arith.constant 0 : index
    %c0_4 = arith.constant 0 : index
    %3 = vector.load %arg3[%c0_2, %c0_3, %c0_4] : memref<1x256x4xf32, #tpu.memory_space<vmem>>, vector<1x256x4xf32>
    %4 = vector.shape_cast %3 : vector<1x256x4xf32> to vector<256x4xf32>
    %5 = vector.shape_cast %2 : vector<256x4xf32> to vector<1x256x4xf32>
    tpu.vector_store %arg3[%c0_2, %c0_3, %c0_4], %5 {strides = array<i32>} : memref<1x256x4xf32, #tpu.memory_space<vmem>>, vector<1x256x4xf32>,
    return
  }
  func.func @transform_0(%arg0: i32, %arg1: i32) -> (i32, i32, i32) {
    %c0_i32 = arith.constant 0 : i32
    %c0_i32_0 = arith.constant 0 : i32
    return %arg0, %c0_i32, %arg1 : i32, i32, i32
  }
  func.func @transform_1(%arg0: i32, %arg1: i32) -> (i32, i32, i32) {
    %c0_i32 = arith.constant 0 : i32
    %c0_i32_0 = arith.constant 0 : i32
    return %arg0, %arg1, %c0_i32 : i32, i32, i32
  }
}

</mosaic_0001>

<bundles_post_ra>
// kernel: tpu_custom_call.1
= control target key start
LH: loop header
LB: loop body
LE: loop exit
PB: predicated region body
PF: predicated region fallthrough
CT: control target
= control target key end

     0   :  { %6 = vsyncpa [#allocation3], 0  ;;  %s688_s0 = inlined_call_operand.hbm [shape: f32[2,4,256], index: 0, kind: input, shape index: {}]   ;;  %s689_s1 = inlined_call_operand.vmem [shape: f32[2,256,4], index: 1, kind: output, shape index: {}]  }
   0x1   :  { %8 = vsyncpa [#allocation3 + $0x1], 0  ;;  %s522_s6 = smov 0   ;;  %s524_s7 = smov 0  }
   0x2   :  { %s526_s8 = smov 0   ;;  %s528_s9 = smov 0  }
   0x3   :  { %s530_s10 = smov 0   ;;  %s532_s11 = smov 0  }
   0x4 LB: > { %s359_s12 = sadd.s32 4294967295, %s509_s11   ;;  %s26_s13 = sadd.s32 1, %s505_s10  ;;  %s509_s11 = sphi %s532_s11, %s14_s11   ;;  %s505_s10 = sphi %s530_s10, %s697_s10   ;;  %s501_s9 = sphi %s528_s9, %s696_s9   ;;  %s497_s8 = sphi %s526_s8, %s695_s8   ;;  %s493_s7 = sphi %s524_s7, %s694_s7   ;;  %s489_s6 = sphi %s522_s6, %s693_s6  }
   0x5   : > { %p28_p0 = scmp.ge.s32.totalorder %s26_s13, 2  ;;  %s35_s14 = sadd.s32 1, %s497_s8 }
   0x6   : > { %p42_p1 = scmp.ne.s32.totalorder %s497_s8, %s493_s7  ;;  %p43_p2 = scmp.eq.s32.totalorder %s509_s11, 0 }
   0x7   : > { %s699_s13 = smov (%p28_p0, %s26_s13), 0  ;;  %p48_p4 = scmp.ne.s32.totalorder %s493_s7, %s489_s6 }
   0x8   : > { %p558_p3 = por %p43_p2, %p42_p1  ;;  %s30_s16 = ssub.s32 %s505_s10, %s699_s13 }
   0x9   : > { %p49_p5 = scmp.eq.s32.totalorder %s359_s12, 0  ;;  %p33_p6 = scmp.eq.s32.totalorder %s30_s16, 0 }
   0xa   : > { %p380_p8 = scmp.lt.s32.totalorder %s509_s11, 2  ;;  %s100_s19 = sand.u32 1, %s497_s8  }
   0xb   : > { %p565_p7 = por %p49_p5, %p48_p4  ;;  %s372_s20 = sshll.u32 %s505_s10, 7 }
   0xc   : > { %s571_s18 = scalar_select %p33_p6, %s497_s8, %s35_s14  }
   0xd   : > { %s363_s21 = sshll.u32 %s100_s19, 3  ;;  %s112_s24 = scalar_lea.hbm %s688_s0, %s372_s20 }
   0xe   : > { %s104_s25 = scalar_lea.vmem [#allocation2], %s363_s21  ;;  %p580_p9 = pnand %p380_p8, %p558_p3 }
   0xf   : > { %s114_s26 = sshll.u32 %s104_s25, 4  ;;  %p366_p10 = scmp.ge.s32.totalorder %s509_s11, 1  ;;  %s115_s26 = int_to_ptr.vmem [resolvable:$true] %s114_s26 }
  0x10   : > { %p119_p11 = scmp.lt.s32.totalorder %s509_s11, 3  ;;  %s101_s28 = scalar_lea.sflag [#allocation3], %s100_s19 }
  0x11   : > { %p433_p12 = pneg %p580_p9  ;;  %s444_s29 = scalar_lea.vmem %s115_s26, 128 }
  0x12   : > { %p445_p13 = scmp.ne.s32.totalorder %s115_s26, %s444_s29  ;;  %s511_s30 = smov [#allocation2]  }
  0x13   : > { %s449_s2 = sshll.u32 %s511_s30, 4  ;;  %s450_s2 = int_to_ptr.vmem [resolvable:$false] %s449_s2 }
  0x14   : > { %p447_p0 = pnand %p445_p13, %p433_p12  ;;  %s451_s3 = scalar_lea.vmem %s450_s2, 256 }
  0x15   : > { %p452_p2 = scmp.lt.s32.totalorder %s115_s26, %s450_s2  ;;  %p453_p3 = scmp.lt.s32.totalorder %s451_s3, %s444_s29 }
  0x16   : > { %p448_p1 = pneg %p447_p0 }
  0x17   : > { %p454_p4 = por %p453_p3, %p452_p2 }
  0x19   : > { %p455_p5 = pnand %p454_p4, %p448_p1 }
  0x1b   : > { %458 = shalt.err (!%p455_p5)
}
  0x1c   : > { %379 = dma.hbm_to_vmem [thread:$0]  (!%p580_p9), %s112_s24, 128, %s115_s26, %s101_s28  }
  0x1d   : > { %p120_p6 = pnand %p366_p10, %p119_p11 }
  0x1e   : > { %s125_s4 = sand.u32 (!%p120_p6), 1, %s493_s7  }
  0x1f   : > { %123 = sbr.rel (%p120_p6) target bundleno = 288 (0x120), region = 24  ;;  %s367_s5 = sshll.u32 (!%p120_p6), %s125_s4, 3 }
  0x20   : > { %s126_s6 = scalar_lea.sflag (!%p120_p6), [#allocation3], %s125_s4  ;;  %s129_s12 = scalar_lea.vmem (!%p120_p6), [#allocation2], %s367_s5 }
  0x24   : > { %484 = dma.done.wait (%p565_p7), %s126_s6, 128  }
  0x25   : > { %486 = vsyncadd (%p565_p7), %s126_s6, 4294967168  ;;  %v163_v0 = vld [vmem:[%s129_s12] sm:$0xff]  ;;  %p154_p8 = scmp.lt.s32.totalorder %s501_s9, 1  ;;  %vm231_vm0 = vcmask 31744  }
  0x26   : > { %167 = vxpose.xlu0.b32.start.end [1/1] (short) %v163_v0, 128  ;;  %v165_v1 = vcombine.high %v163_v0, %v163_v0 }
  0x27   : > { %s701_s9 = smov (!%p154_p8, %s501_s9), 1 }
  0x28   : > { %s373_s14 = sshll.u32 %s701_s9, 8 }
  0x29   : > { %s604_s19 = scalar_lea.vmem %s689_s1, %s373_s14 }
  0x63   : > { %199 = vxpose.xlu0.b32.start.end [1/1] (short) %v165_v1, 128 }
  0xa2   : > { %v183_v2 = vpop.trf.xlu0 }
  0xa3   : > { %232 = vst.msk [vmem:[%s604_s19] sm:$0xff] %vm231_vm0, %v183_v2 }
  0xa6   : > { %v184_v3 = vpop.trf.xlu0 }
  0xa7   : > { %233 = vst.msk [vmem:[%s604_s19 + $0x8] sm:$0xff] %vm231_vm0, %v184_v3 }
  0xaa   : > { %v185_v4 = vpop.trf.xlu0 }
  0xab   : > { %234 = vst.msk [vmem:[%s604_s19 + $0x10] sm:$0xff] %vm231_vm0, %v185_v4 }
  0xae   : > { %v186_v5 = vpop.trf.xlu0 }
  0xaf   : > { %235 = vst.msk [vmem:[%s604_s19 + $0x18] sm:$0xff] %vm231_vm0, %v186_v5 }
  0xb2   : > { %v187_v6 = vpop.trf.xlu0 }
  0xb3   : > { %236 = vst.msk [vmem:[%s604_s19 + $0x20] sm:$0xff] %vm231_vm0, %v187_v6 }
  0xb6   : > { %v188_v7 = vpop.trf.xlu0 }
  0xb7   : > { %237 = vst.msk [vmem:[%s604_s19 + $0x28] sm:$0xff] %vm231_vm0, %v188_v7 }
  0xba   : > { %v189_v8 = vpop.trf.xlu0 }
  0xbb   : > { %238 = vst.msk [vmem:[%s604_s19 + $0x30] sm:$0xff] %vm231_vm0, %v189_v8 }
  0xbe   : > { %v190_v9 = vpop.trf.xlu0 }
  0xbf   : > { %239 = vst.msk [vmem:[%s604_s19 + $0x38] sm:$0xff] %vm231_vm0, %v190_v9 }
  0xc2   : > { %v191_v10 = vpop.trf.xlu0 }
  0xc3   : > { %240 = vst.msk [vmem:[%s604_s19 + $0x40] sm:$0xff] %vm231_vm0, %v191_v10 }
  0xc6   : > { %v192_v11 = vpop.trf.xlu0 }
  0xc7   : > { %241 = vst.msk [vmem:[%s604_s19 + $0x48] sm:$0xff] %vm231_vm0, %v192_v11 }
  0xca   : > { %v193_v12 = vpop.trf.xlu0 }
  0xcb   : > { %242 = vst.msk [vmem:[%s604_s19 + $0x50] sm:$0xff] %vm231_vm0, %v193_v12 }
  0xce   : > { %v194_v13 = vpop.trf.xlu0 }
  0xcf   : > { %243 = vst.msk [vmem:[%s604_s19 + $0x58] sm:$0xff] %vm231_vm0, %v194_v13 }
  0xd2   : > { %v195_v14 = vpop.trf.xlu0 }
  0xd3   : > { %244 = vst.msk [vmem:[%s604_s19 + $0x60] sm:$0xff] %vm231_vm0, %v195_v14 }
  0xd6   : > { %v196_v15 = vpop.trf.xlu0 }
  0xd7   : > { %245 = vst.msk [vmem:[%s604_s19 + $0x68] sm:$0xff] %vm231_vm0, %v196_v15 }
  0xda   : > { %v197_v16 = vpop.trf.xlu0 }
  0xdb   : > { %246 = vst.msk [vmem:[%s604_s19 + $0x70] sm:$0xff] %vm231_vm0, %v197_v16 }
  0xde   : > { %v198_v17 = vpop.trf.xlu0 }
  0xdf   : > { %247 = vst.msk [vmem:[%s604_s19 + $0x78] sm:$0xff] %vm231_vm0, %v198_v17 }
  0xe2   : > { %v215_v18 = vpop.trf.xlu0 }
  0xe3   : > { %248 = vst.msk [vmem:[%s604_s19 + $0x80] sm:$0xff] %vm231_vm0, %v215_v18 }
  0xe6   : > { %v216_v19 = vpop.trf.xlu0 }
  0xe7   : > { %249 = vst.msk [vmem:[%s604_s19 + $0x88] sm:$0xff] %vm231_vm0, %v216_v19 }
  0xea   : > { %v217_v20 = vpop.trf.xlu0 }
  0xeb   : > { %250 = vst.msk [vmem:[%s604_s19 + $0x90] sm:$0xff] %vm231_vm0, %v217_v20 }
  0xee   : > { %v218_v21 = vpop.trf.xlu0 }
  0xef   : > { %251 = vst.msk [vmem:[%s604_s19 + $0x98] sm:$0xff] %vm231_vm0, %v218_v21 }
  0xf2   : > { %v219_v22 = vpop.trf.xlu0 }
  0xf3   : > { %252 = vst.msk [vmem:[%s604_s19 + $0xa0] sm:$0xff] %vm231_vm0, %v219_v22 }
  0xf6   : > { %v220_v23 = vpop.trf.xlu0 }
  0xf7   : > { %253 = vst.msk [vmem:[%s604_s19 + $0xa8] sm:$0xff] %vm231_vm0, %v220_v23 }
  0xfa   : > { %v221_v24 = vpop.trf.xlu0 }
  0xfb   : > { %254 = vst.msk [vmem:[%s604_s19 + $0xb0] sm:$0xff] %vm231_vm0, %v221_v24 }
  0xfe   : > { %v222_v25 = vpop.trf.xlu0 }
  0xff   : > { %255 = vst.msk [vmem:[%s604_s19 + $0xb8] sm:$0xff] %vm231_vm0, %v222_v25 }
 0x102   : > { %v223_v26 = vpop.trf.xlu0 }
 0x103   : > { %256 = vst.msk [vmem:[%s604_s19 + $0xc0] sm:$0xff] %vm231_vm0, %v223_v26 }
 0x106   : > { %v224_v27 = vpop.trf.xlu0 }
 0x107   : > { %257 = vst.msk [vmem:[%s604_s19 + $0xc8] sm:$0xff] %vm231_vm0, %v224_v27 }
 0x10a   : > { %v225_v28 = vpop.trf.xlu0 }
 0x10b   : > { %258 = vst.msk [vmem:[%s604_s19 + $0xd0] sm:$0xff] %vm231_vm0, %v225_v28 }
 0x10e   : > { %v226_v29 = vpop.trf.xlu0 }
 0x10f   : > { %259 = vst.msk [vmem:[%s604_s19 + $0xd8] sm:$0xff] %vm231_vm0, %v226_v29 }
 0x112   : > { %v227_v30 = vpop.trf.xlu0 }
 0x113   : > { %260 = vst.msk [vmem:[%s604_s19 + $0xe0] sm:$0xff] %vm231_vm0, %v227_v30 }
 0x116   : > { %v228_v31 = vpop.trf.xlu0 }
 0x117   : > { %261 = vst.msk [vmem:[%s604_s19 + $0xe8] sm:$0xff] %vm231_vm0, %v228_v31 }
 0x11a   : > { %v229_v32 = vpop.trf.xlu0 }
 0x11b   : > { %262 = vst.msk [vmem:[%s604_s19 + $0xf0] sm:$0xff] %vm231_vm0, %v229_v32 }
 0x11e   : > { %v230_v33 = vpop.trf.xlu0 }
 0x11f   : > { %263 = vst.msk [vmem:[%s604_s19 + $0xf8] sm:$0xff] %vm231_vm0, %v230_v33 }
 0x120 PF: > { %s14_s11 = sadd.s32 1, %s509_s11   ;;  %s693_s6 = smov %s493_s7 }
 0x121   : > { %p11_p7 = scmp.ge.s32.totalorder %s14_s11, 4   ;;  %s694_s7 = smov %s497_s8 }
 0x122   : > { %s695_s8 = smov %s571_s18  ;;  %s696_s9 = smov %s505_s10 }
 0x123   : > { %s697_s10 = smov %s699_s13  ;;  %13 = sbr.rel (!%p11_p7) target bundleno = 4 (0x4), region = 64 }
 0x128   :  { %294 = vsyncpa [#allocation3], 1 }
 0x129   :  { %296 = vsyncpa [#allocation3 + $0x1], 1 }

</bundles_post_ra>
